<compile_context>
chip_gen: v6e
topology: v6e:2x2x1
jax: 0.10.0
libtpu: 0.0.40
codegen_flags: <defaults>
</compile_context>

<pallas_src>
import functools

import jax
import jax.numpy as jnp
from jax.experimental import pallas as pl
from jax.experimental.pallas import tpu as pltpu

_LN_EPS = 1e-5
_VMEM_BUDGET = 26 * 1024 * 1024          # per-step buffer budget (fits v5e/v6e/v7x)


# ------------------------------ small helpers --------------------------------

def _round_up(x, m):
    return (x + m - 1) // m * m


def _pick_tile(dim, target, align):
    """Largest tile <= target that is a multiple of `align` and divides `dim`,
    otherwise the full dim (full-extent blocks are always legal)."""
    if dim <= target:
        return dim
    t = (target // align) * align
    while t >= align:
        if dim % t == 0:
            return t
        t -= align
    return dim


def _head_group_size(n_heads, d_head):
    """Smallest head group whose column width is 128-lane aligned (else all heads)."""
    for hg in range(1, n_heads):
        if n_heads % hg == 0 and (hg * d_head) % 128 == 0 and hg * d_head <= 512:
            return hg
    return n_heads


# ------------------------- fused (LN+)matmul kernel --------------------------

def _make_matmul_kernel(has_ln, has_bias, has_residual, activation, emit_stats):
    def kernel(*refs):
        idx = 0
        x_ref = refs[idx]; idx += 1
        if has_ln:
            mu_ref, rstd_ref, g_ref, beta_ref = refs[idx:idx + 4]; idx += 4
        w_ref = refs[idx]; idx += 1
        if has_bias:
            b_ref = refs[idx]; idx += 1
        if has_residual:
            r_ref = refs[idx]; idx += 1
        o_ref = refs[idx]; idx += 1
        if emit_stats:
            mu_o_ref = refs[idx]; idx += 1
            rstd_o_ref = refs[idx]; idx += 1
        acc_ref = refs[idx]

        k = pl.program_id(2)

        @pl.when(k == 0)
        def _():
            acc_ref[...] = jnp.zeros_like(acc_ref)

        x = x_ref[...]
        if has_ln:
            xf = x.astype(jnp.float32)
            xf = (xf - mu_ref[...]) * rstd_ref[...]
            xf = xf * g_ref[...] + beta_ref[...]
            x = xf.astype(jnp.bfloat16)
        acc_ref[...] += jnp.dot(x, w_ref[...], preferred_element_type=jnp.float32)

        @pl.when(k == pl.num_programs(2) - 1)
        def _():
            y = acc_ref[...]
            if has_bias:
                y = y + b_ref[...]
            if activation == "quick_gelu":                 # CLIP: x * sigmoid(1.702 x)
                y = y * jax.nn.sigmoid(1.702 * y)
            if has_residual:
                y = y + r_ref[...].astype(jnp.float32)
            o_ref[...] = y.astype(o_ref.dtype)
            if emit_stats:                                  # LN stats of the output row
                mu = jnp.mean(y, axis=-1, keepdims=True)
                yc = y - mu
                var = jnp.mean(yc * yc, axis=-1, keepdims=True)
                mu_o_ref[...] = mu
                rstd_o_ref[...] = jax.lax.rsqrt(var + _LN_EPS)

    return kernel


def fused_matmul(x, w, bias=None, ln=None, activation=None, residual=None,
                 emit_ln_stats=False, out_dtype=jnp.bfloat16):
    """o = act(LN(x) @ w + bias) + residual   (every piece optional).

    x:(M,K) w:(K,N) bias:(N,) residual:(M,N); ln = (mu(M,1), rstd(M,1),
    gamma(K,), beta(K,)).  bf16 MXU operands, f32 accumulator, k-innermost grid.
    If emit_ln_stats, also returns (mu, rstd) of the output rows (tn is forced
    to N so each block sees a full row)."""
    M, K = x.shape
    K2, N = w.shape
    assert K == K2
    x = x.astype(jnp.bfloat16)
    w = w.astype(jnp.bfloat16)

    # ---- tile selection: keep the whole weight VMEM-resident when it fits ----
    if emit_ln_stats or K * N * 2 <= 12 * 1024 * 1024:
        tn, tk = N, K
    else:
        tn = _pick_tile(N, 512, 128)
        tk = _pick_tile(K, 1024, 128)
    tm = _pick_tile(M, 512, 16)

    def vmem_bytes(tm_):
        b = 2 * tm_ * tk * 2 + 2 * tk * tn * 2 + 2 * tm_ * tn * 2 + tm_ * tn * 4
        if ln is not None:
            b += 2 * (2 * tm_ * 4) + 2 * (2 * tk * 4)
        if bias is not None:
            b += 2 * tn * 4
        if residual is not None:
            b += 2 * tm_ * tn * 2
        if emit_ln_stats:
            b += 4 * tm_ * 4
        return b

    while vmem_bytes(tm) > _VMEM_BUDGET:
        nt = _pick_tile(M, max(tm // 2, 16), 16)
        if nt >= tm or nt < 16:
            break
        tm = nt

    grid = (M // tm, N // tn, K // tk)
    vmem_limit = int(min(max(vmem_bytes(tm) + 4 * 1024 * 1024, 32 * 1024 * 1024),
                         48 * 1024 * 1024))

    inputs = [x]
    in_specs = [pl.BlockSpec((tm, tk), lambda i, j, k: (i, k))]
    if ln is not None:
        mu, rstd, gamma, beta = ln
        inputs += [mu, rstd,
                   gamma.reshape(1, K).astype(jnp.float32),
                   beta.reshape(1, K).astype(jnp.float32)]
        in_specs += [pl.BlockSpec((tm, 1), lambda i, j, k: (i, 0)),
                     pl.BlockSpec((tm, 1), lambda i, j, k: (i, 0)),
                     pl.BlockSpec((1, tk), lambda i, j, k: (0, k)),
                     pl.BlockSpec((1, tk), lambda i, j, k: (0, k))]
    inputs.append(w)
    in_specs.append(pl.BlockSpec((tk, tn), lambda i, j, k: (k, j)))
    if bias is not None:
        inputs.append(bias.reshape(1, N).astype(jnp.float32))
        in_specs.append(pl.BlockSpec((1, tn), lambda i, j, k: (0, j)))
    if residual is not None:
        inputs.append(residual)
        in_specs.append(pl.BlockSpec((tm, tn), lambda i, j, k: (i, j)))

    if emit_ln_stats:
        out_shape = (jax.ShapeDtypeStruct((M, N), out_dtype),
                     jax.ShapeDtypeStruct((M, 1), jnp.float32),
                     jax.ShapeDtypeStruct((M, 1), jnp.float32))
        out_specs = (pl.BlockSpec((tm, tn), lambda i, j, k: (i, j)),
                     pl.BlockSpec((tm, 1), lambda i, j, k: (i, 0)),
                     pl.BlockSpec((tm, 1), lambda i, j, k: (i, 0)))
    else:
        out_shape = jax.ShapeDtypeStruct((M, N), out_dtype)
        out_specs = pl.BlockSpec((tm, tn), lambda i, j, k: (i, j))

    bytes_acc = M * K * 2 + K * N * 2 + M * N * 2
    if residual is not None:
        bytes_acc += M * N * 2
    if bias is not None:
        bytes_acc += N * 4
    if ln is not None:
        bytes_acc += 2 * M * 4 + 2 * K * 4
    cost = pl.CostEstimate(
        flops=2 * M * K * N,
        transcendentals=M * N if activation == "quick_gelu" else 0,
        bytes_accessed=bytes_acc)

    kernel = _make_matmul_kernel(ln is not None, bias is not None,
                                 residual is not None, activation, emit_ln_stats)
    return pl.pallas_call(
        kernel,
        out_shape=out_shape,
        grid_spec=pltpu.PrefetchScalarGridSpec(
            num_scalar_prefetch=0,
            grid=grid,
            in_specs=in_specs,
            out_specs=out_specs,
            scratch_shapes=[pltpu.VMEM((tm, tn), jnp.float32)]),
        compiler_params=pltpu.CompilerParams(
            dimension_semantics=("parallel", "parallel", "arbitrary"),
            vmem_limit_bytes=vmem_limit),
        cost_estimate=cost,
    )(*inputs)


# ------------------------------ LayerNorm kernel ------------------------------

def _layernorm_kernel(x_ref, g_ref, b_ref, o_ref, mu_o_ref, rstd_o_ref, *, eps):
    x = x_ref[...].astype(jnp.float32)
    mu = jnp.mean(x, axis=-1, keepdims=True)
    xc = x - mu
    var = jnp.mean(xc * xc, axis=-1, keepdims=True)
    y = xc * jax.lax.rsqrt(var + eps) * g_ref[...] + b_ref[...]
    o_ref[...] = y.astype(o_ref.dtype)
    # stats of the *output* rows, consumed by the next fused-LN matmul prologue
    mu2 = jnp.mean(y, axis=-1, keepdims=True)
    yc = y - mu2
    var2 = jnp.mean(yc * yc, axis=-1, keepdims=True)
    mu_o_ref[...] = mu2
    rstd_o_ref[...] = jax.lax.rsqrt(var2 + eps)


def layernorm(x, gamma, beta, eps=_LN_EPS, out_dtype=jnp.bfloat16):
    """Standalone row LayerNorm (pre_layrnorm).  Also emits (mu, rstd) of its
    output so the following QKV projection can fuse LN1 without re-reading h."""
    M, D = x.shape
    tm = _pick_tile(M, 512, 16)
    kernel = functools.partial(_layernorm_kernel, eps=eps)
    bytes_acc = M * D * x.dtype.itemsize + M * D * 2 + 2 * M * 4 + 2 * D * 4
    return pl.pallas_call(
        kernel,
        out_shape=(jax.ShapeDtypeStruct((M, D), out_dtype),
                   jax.ShapeDtypeStruct((M, 1), jnp.float32),
                   jax.ShapeDtypeStruct((M, 1), jnp.float32)),
        grid_spec=pltpu.PrefetchScalarGridSpec(
            num_scalar_prefetch=0,
            grid=(M // tm,),
            in_specs=[pl.BlockSpec((tm, D), lambda i: (i, 0)),
                      pl.BlockSpec((1, D), lambda i: (0, 0)),
                      pl.BlockSpec((1, D), lambda i: (0, 0))],
            out_specs=(pl.BlockSpec((tm, D), lambda i: (i, 0)),
                       pl.BlockSpec((tm, 1), lambda i: (i, 0)),
                       pl.BlockSpec((tm, 1), lambda i: (i, 0)))),
        compiler_params=pltpu.CompilerParams(
            dimension_semantics=("parallel",),
            vmem_limit_bytes=32 * 1024 * 1024),
        cost_estimate=pl.CostEstimate(flops=10 * M * D, transcendentals=0,
                                      bytes_accessed=bytes_acc),
    )(x, gamma.reshape(1, D).astype(jnp.float32),
      beta.reshape(1, D).astype(jnp.float32))


# ------------------------------ attention kernel ------------------------------

def _attention_kernel(qkv_ref, o_ref, *, heads_per_group, d_head, scale, s_real):
    # qkv_ref: (1, S_pad, 3*W) with columns [q_h.. | k_h.. | v_h..] for one head group.
    W = heads_per_group * d_head
    S = qkv_ref.shape[1]
    need_mask = s_real < S
    if need_mask:
        kmask = jax.lax.broadcasted_iota(jnp.int32, (1, S), 1) < s_real
    outs = []
    for h in range(heads_per_group):                 # static unroll over group heads
        q = qkv_ref[0, :, h * d_head:(h + 1) * d_head]
        k = qkv_ref[0, :, W + h * d_head:W + (h + 1) * d_head]
        v = qkv_ref[0, :, 2 * W + h * d_head:2 * W + (h + 1) * d_head]
        s = jax.lax.dot_general(q, k, (((1,), (1,)), ((), ())),
                                preferred_element_type=jnp.float32) * scale
        if need_mask:
            s = jnp.where(kmask, s, -1e30)           # padded key positions
        m = jnp.max(s, axis=-1, keepdims=True)
        p = jnp.exp(s - m)
        l = jnp.sum(p, axis=-1, keepdims=True)
        o = jnp.dot(p.astype(v.dtype), v, preferred_element_type=jnp.float32)
        outs.append(o * pl.reciprocal(l, approx=True))
    out = outs[0] if len(outs) == 1 else jnp.concatenate(outs, axis=-1)
    o_ref[0] = out.astype(o_ref.dtype)               # lane-dense (S, W) store


def attention(qkv_grouped, n_heads, s_real, out_dtype=jnp.bfloat16):
    """qkv_grouped: (B, S_pad, 3D) with columns laid out head-group-major
    ([q_g | k_g | v_g] per group) -> (B, S_pad, D) attention output in standard
    head-concat column order."""
    B, S, threeD = qkv_grouped.shape
    D = threeD // 3
    d_head = D // n_heads
    hg = _head_group_size(n_heads, d_head)
    W = hg * d_head
    G = D // W
    kernel = functools.partial(_attention_kernel, heads_per_group=hg,
                               d_head=d_head, scale=float(d_head) ** -0.5,
                               s_real=s_real)
    cost = pl.CostEstimate(flops=4 * B * n_heads * S * S * d_head,
                           transcendentals=B * n_heads * S * S,
                           bytes_accessed=B * S * (threeD + D) * 2)
    return pl.pallas_call(
        kernel,
        out_shape=jax.ShapeDtypeStruct((B, S, D), out_dtype),
        grid_spec=pltpu.PrefetchScalarGridSpec(
            num_scalar_prefetch=0,
            grid=(B, G),
            in_specs=[pl.BlockSpec((1, S, 3 * W), lambda b, g: (b, 0, g))],
            out_specs=pl.BlockSpec((1, S, W), lambda b, g: (b, 0, g))),
        compiler_params=pltpu.CompilerParams(
            dimension_semantics=("parallel", "parallel"),
            vmem_limit_bytes=32 * 1024 * 1024),
        cost_estimate=cost,
    )(qkv_grouped)


# ------------------------- model glue (plain JAX) ----------------------------

def init_params(key, cfg):
    C, P, D, I, L, S = (cfg["channels"], cfg["patch_size"], cfg["hidden"],
                        cfg["intermediate"], cfg["layers"], cfg["seq"])
    nH = cfg["heads"]
    dh = D // nH
    W = _head_group_size(nH, dh) * dh
    std = 0.02

    def nrm(k, shape):
        return (std * jax.random.normal(k, shape, jnp.float32)).astype(jnp.bfloat16)

    keys = jax.random.split(key, 4 + L)
    params = {
        # conv weight stored as (C*P*P, D) == torch (D, C, P, P) flattened & transposed
        "patch_w": nrm(keys[0], (C * P * P, D)),
        "class_emb": nrm(keys[1], (D,)),
        "pos_emb": nrm(keys[2], (S, D)),
        "pre_ln_g": jnp.ones((D,), jnp.float32),
        "pre_ln_b": jnp.zeros((D,), jnp.float32),
        "layers": [],
    }
    for li in range(L):
        lk = jax.random.split(keys[4 + li], 8)
        qw, kw, vw = nrm(lk[0], (D, D)), nrm(lk[1], (D, D)), nrm(lk[2], (D, D))
        # fused QKV weight in head-group-major layout: [g: q_g | k_g | v_g]
        qkv_w = jnp.concatenate(
            [jnp.concatenate([qw[:, g * W:(g + 1) * W],
                              kw[:, g * W:(g + 1) * W],
                              vw[:, g * W:(g + 1) * W]], axis=1)
             for g in range(D // W)], axis=1)
        params["layers"].append({
            "ln1_g": jnp.ones((D,), jnp.float32), "ln1_b": jnp.zeros((D,), jnp.float32),
            "qkv_w": qkv_w,
            "qkv_b": jnp.zeros((3 * D,), jnp.float32),
            "o_w": nrm(lk[3], (D, D)), "o_b": jnp.zeros((D,), jnp.float32),
            "ln2_g": jnp.ones((D,), jnp.float32), "ln2_b": jnp.zeros((D,), jnp.float32),
            "fc1_w": nrm(lk[4], (D, I)), "fc1_b": jnp.zeros((I,), jnp.float32),
            "fc2_w": nrm(lk[5], (I, D)), "fc2_b": jnp.zeros((D,), jnp.float32),
        })
    return params


def clip_vision_tower_forward(images, params, cfg,
                              select_layer=-2, select_feature="patch"):
    """Equivalent of CLIPVisionTower.forward + feature_select.
    images: (B, C, H, W) NCHW array (or a list of (C, H, W) images)."""
    if isinstance(images, (list, tuple)):           # torch list branch
        return [clip_vision_tower_forward(im[None], params, cfg,
                                          select_layer, select_feature)
                for im in images]

    B, C, H, Wi = images.shape
    P, D, nH, L = cfg["patch_size"], cfg["hidden"], cfg["heads"], cfg["layers"]
    Hg, Wg = H // P, Wi // P
    nP = Hg * Wg
    S = nP + 1

    if select_feature not in ("patch", "cls_patch"):
        raise ValueError(f"Unexpected select feature: {select_feature}")

    # hidden_states[j] == activations after j transformer layers (j=0: embeddings
    # after pre_layrnorm).  Only run the layers that feed the selected state.
    n_run = select_layer % (L + 1)

    # --- embeddings ---
    # patch extraction (glue): (B,C,H,W) -> (B*nP, C*P*P) in (C, ph, pw) order,
    # matching torch Conv2d(kernel=stride=P) weight flattening.
    patches = images.reshape(B, C, Hg, P, Wg, P).transpose(0, 2, 4, 1, 3, 5)
    patches = patches.reshape(B * nP, C * P * P).astype(jnp.bfloat16)
    patch_emb = fused_matmul(patches, params["patch_w"])            # conv bias=False
    cls = jnp.broadcast_to(params["class_emb"].reshape(1, 1, D), (B, 1, D))
    x = jnp.concatenate([cls, patch_emb.reshape(B, nP, D)], axis=1)
    x = x + params["pos_emb"][None].astype(x.dtype)

    # pad the token axis once (zeros, finite) so every downstream kernel gets
    # large, (8,128)-friendly tiles; padded rows are dropped at the end and
    # padded key positions are masked inside attention.
    S_pad = max(_round_up(S, 64), 64)
    if S_pad != S:
        x = jnp.pad(x, ((0, 0), (0, S_pad - S), (0, 0)))
    x = x.reshape(B * S_pad, D).astype(jnp.bfloat16)

    # pre_layrnorm -> hidden_states[0]; also yields stats for the first LN1 fusion
    h, mu, rstd = layernorm(x, params["pre_ln_g"], params["pre_ln_b"])

    for li, layer in enumerate(params["layers"][:n_run]):
        last = li == n_run - 1
        # --- self attention: LN1 fused into QKV proj, residual fused into o proj ---
        qkv = fused_matmul(h, layer["qkv_w"], bias=layer["qkv_b"],
                           ln=(mu, rstd, layer["ln1_g"], layer["ln1_b"]))
        attn = attention(qkv.reshape(B, S_pad, 3 * D), nH, s_real=S)
        attn = attn.reshape(B * S_pad, D)
        # o proj emits LN2 stats of the new hidden state from its epilogue
        h, mu, rstd = fused_matmul(attn, layer["o_w"], bias=layer["o_b"],
                                   residual=h, emit_ln_stats=True)
        # --- MLP: LN2 fused into fc1(+quick_gelu), residual fused into fc2 ---
        t = fused_matmul(h, layer["fc1_w"], bias=layer["fc1_b"],
                         ln=(mu, rstd, layer["ln2_g"], layer["ln2_b"]),
                         activation="quick_gelu")
        if last:
            h = fused_matmul(t, layer["fc2_w"], bias=layer["fc2_b"], residual=h)
        else:
            h, mu, rstd = fused_matmul(t, layer["fc2_w"], bias=layer["fc2_b"],
                                       residual=h, emit_ln_stats=True)

    feat = h.reshape(B, S_pad, D)[:, :S]            # strip padded tokens
    if select_feature == "patch":
        feat = feat[:, 1:]                          # drop CLS token
    return feat.astype(images.dtype)


# ----------------------------------- main ------------------------------------

if __name__ == "__main__":
    # TODO(synk): PIL image loading / CLIPImageProcessor preprocessing and HF
    # pretrained-weight loading have no Pallas equivalent; synthetic params/inputs.
    cfg = dict(channels=3, patch_size=4, image_size=16,
               hidden=32, heads=4, intermediate=64, layers=2)
    cfg["seq"] = (cfg["image_size"] // cfg["patch_size"]) ** 2 + 1   # 17

    key = jax.random.PRNGKey(0)
    k_params, k_img = jax.random.split(key)
    params = init_params(k_params, cfg)

    B = 2
    images = jax.random.normal(
        k_img, (B, cfg["channels"], cfg["image_size"], cfg["image_size"]),
        jnp.float32)                                                 # NCHW

    out = clip_vision_tower_forward(images, params, cfg,
                                    select_layer=-2, select_feature="patch")
    out = jax.block_until_ready(out)
    assert out.shape == (B, (cfg["image_size"] // cfg["patch_size"]) ** 2,
                         cfg["hidden"]), out.shape
    assert out.dtype == images.dtype
    assert jnp.all(jnp.isfinite(out))
    print("KERNEL_OK")
</pallas_src>

<mosaic_0001>
module attributes {stable_mosaic.version = 11 : i64} {
  func.func @kernel(%arg0: i32, %arg1: i32, %arg2: i32, %arg3: memref<32x48xbf16, #tpu.memory_space<vmem>>, %arg4: memref<48x32xbf16, #tpu.memory_space<vmem>>, %arg5: memref<32x32xbf16, #tpu.memory_space<vmem>>, %arg6: memref<32x32xf32, #tpu.memory_space<vmem>>) attributes {dimension_semantics = [#tpu.dimension_semantics<parallel>, #tpu.dimension_semantics<parallel>, #tpu.dimension_semantics<arbitrary>], iteration_bounds = array<i64: 1, 1, 1>, scalar_prefetch = 0 : i64, scratch_operands = 1 : i64, tpu.core_type = #tpu.core_type<tc>, window_params = [{transform_indices = @transform_0, window_bounds = array<i64: 32, 48>}, {transform_indices = @transform_1, window_bounds = array<i64: 48, 32>}, {transform_indices = @transform_2, window_bounds = array<i64: 32, 32>}]} {
    %c0_i32 = arith.constant 0 : i32
    %0 = arith.cmpi eq, %arg2, %c0_i32 : i32
    %1 = arith.extui %0 : i1 to i32
    %c0_i32_0 = arith.constant 0 : i32
    %2 = arith.cmpi ne, %1, %c0_i32_0 : i32
    scf.if %2 {
      %cst_10 = arith.constant 0.000000e+00 : f32
      %12 = vector.broadcast %cst_10 : f32 to vector<32x32xf32>
      %c0_11 = arith.constant 0 : index
      %c0_12 = arith.constant 0 : index
      %13 = vector.load %arg6[%c0_11, %c0_12] : memref<32x32xf32, #tpu.memory_space<vmem>>, vector<32x32xf32>
      tpu.vector_store %arg6[%c0_11, %c0_12], %12 {strides = array<i32>} : memref<32x32xf32, #tpu.memory_space<vmem>>, vector<32x32xf32>,
    } else {
    }
    %c0 = arith.constant 0 : index
    %c0_1 = arith.constant 0 : index
    %3 = vector.load %arg3[%c0, %c0_1] : memref<32x48xbf16, #tpu.memory_space<vmem>>, vector<32x48xbf16>
    %c0_2 = arith.constant 0 : index
    %c0_3 = arith.constant 0 : index
    %4 = vector.load %arg6[%c0_2, %c0_3] : memref<32x32xf32, #tpu.memory_space<vmem>>, vector<32x32xf32>
    %c0_4 = arith.constant 0 : index
    %c0_5 = arith.constant 0 : index
    %5 = vector.load %arg4[%c0_4, %c0_5] : memref<48x32xbf16, #tpu.memory_space<vmem>>, vector<48x32xbf16>
    %cst = arith.constant dense<0.000000e+00> : vector<32x32xf32>
    %6 = tpu.matmul %3, %5, %cst {dimension_numbers = #tpu.dot_dimension_numbers<[1], [0], [0], [1], [0, 0, 1, 1], [], []>} : vector<32x48xbf16>, vector<48x32xbf16>, vector<32x32xf32> -> vector<32x32xf32>
    %7 = arith.addf %4, %6 : vector<32x32xf32>
    %c0_6 = arith.constant 0 : index
    %c0_7 = arith.constant 0 : index
    %8 = vector.load %arg6[%c0_6, %c0_7] : memref<32x32xf32, #tpu.memory_space<vmem>>, vector<32x32xf32>
    tpu.vector_store %arg6[%c0_6, %c0_7], %7 {strides = array<i32>} : memref<32x32xf32, #tpu.memory_space<vmem>>, vector<32x32xf32>,
    %c0_i32_8 = arith.constant 0 : i32
    %9 = arith.cmpi eq, %arg2, %c0_i32_8 : i32
    %10 = arith.extui %9 : i1 to i32
    %c0_i32_9 = arith.constant 0 : i32
    %11 = arith.cmpi ne, %10, %c0_i32_9 : i32
    scf.if %11 {
      %c0_10 = arith.constant 0 : index
      %c0_11 = arith.constant 0 : index
      %12 = vector.load %arg6[%c0_10, %c0_11] : memref<32x32xf32, #tpu.memory_space<vmem>>, vector<32x32xf32>
      %13 = arith.truncf %12 : vector<32x32xf32> to vector<32x32xbf16>
      %c0_12 = arith.constant 0 : index
      %c0_13 = arith.constant 0 : index
      %14 = vector.load %arg5[%c0_12, %c0_13] : memref<32x32xbf16, #tpu.memory_space<vmem>>, vector<32x32xbf16>
      tpu.vector_store %arg5[%c0_12, %c0_13], %13 {strides = array<i32>} : memref<32x32xbf16, #tpu.memory_space<vmem>>, vector<32x32xbf16>,
    } else {
    }
    return
  }
  func.func @transform_0(%arg0: i32, %arg1: i32, %arg2: i32) -> (i32, i32) {
    %c0_i32 = arith.constant 0 : i32
    return %arg0, %arg2 : i32, i32
  }
  func.func @transform_1(%arg0: i32, %arg1: i32, %arg2: i32) -> (i32, i32) {
    %c0_i32 = arith.constant 0 : i32
    return %arg2, %arg1 : i32, i32
  }
  func.func @transform_2(%arg0: i32, %arg1: i32, %arg2: i32) -> (i32, i32) {
    %c0_i32 = arith.constant 0 : i32
    return %arg0, %arg1 : i32, i32
  }
}

</mosaic_0001>

<bundles_post_ra>
// kernel: tpu_custom_call.1
= control target key start
LH: loop header
LB: loop body
LE: loop exit
PB: predicated region body
PF: predicated region fallthrough
CT: control target
= control target key end

     0   :  { %vm17_vm0 = vcmask 261120   ;;  %vm64_vm1 = vcmask 392192   ;;  %v234_v3 = vmov 0.0   ;;  %s281_s0 = inlined_call_operand.vmem [shape: bf16[32,48], index: 0, kind: input, shape index: {}]   ;;  %s282_s1 = inlined_call_operand.vmem [shape: bf16[48,32], index: 1, kind: input, shape index: {}]   ;;  %s283_s2 = inlined_call_operand.hbm [shape: bf16[32,32], index: 2, kind: output, shape index: {}]  }
   0x1   :  { %v207_v0 = vld [vmem:[%s282_s1 + $0x10] sm:$0xff]   ;;  %v208_v1 = vld [vmem:[%s282_s1 + $0x8] sm:$0xff]   ;;  %v210_v2 = vld [vmem:[%s281_s0] sm:$0xff]   ;;  %20 = vst.msk [vmem:[#allocation2 + $0x10] sm:$0xff] %vm17_vm0, %v234_v3 }
   0x2   :  { %193 = vmatprep.subr.bf16.mxu0 %v207_v0  ;;  %18 = vst.msk [vmem:[#allocation2] sm:$0xff] %vm17_vm0, %v234_v3  ;;  %19 = vst.msk [vmem:[#allocation2 + $0x8] sm:$0xff] %vm17_vm0, %v234_v3  ;;  %v209_v4 = vld [vmem:[%s282_s1] sm:$0xff]   ;;  %199 = vmatprep.mubr.msk.bf16.mxu0 %vm64_vm1, %v210_v2 }
   0x3   :  { %194 = vmatpush3.bf16.msra.mxu0 %v207_v0  ;;  %21 = vst.msk [vmem:[#allocation2 + $0x18] sm:$0xff] %vm17_vm0, %v234_v3 }
   0x4   :  { %195 = vmatprep.subr.bf16.mxu0 %v208_v1 }
   0x5   :  { %7 = vsyncpa [#allocation4], 0  ;;  %v211_v5 = vld [vmem:[%s281_s0 + $0x8] sm:$0xff]   ;;  %vm152_vm2 = vcmask 257024   ;;  %s235_s0 = smov [#allocation3]  }
   0x6   :  { %s162_s1 = sshll.u32 %s235_s0, 4  ;;  %s163_s1 = int_to_ptr.vmem [resolvable:$true] %s162_s1 }
   0x7   :  { %196 = vmatpush3.bf16.msra.mxu0 %v208_v1  ;;  %s212_s19 = scalar_lea.vmem %s163_s1, 256  ;;  %p217_p1 = scmp.lt.s32.totalorder %s163_s1, %s163_s1 }
   0x8   :  { %197 = vmatprep.subr.bf16.mxu0 %v209_v4  ;;  %v28_v6 = vld [vmem:[#allocation2 + $0x10] sm:$0xff]  ;;  %p213_p0 = scmp.ne.s32.totalorder %s163_s1, %s212_s19  ;;  %p218_p2 = scmp.lt.s32.totalorder %s212_s19, %s212_s19 }
   0x9   :  { %v26_v8 = vld [vmem:[#allocation2] sm:$0xff]  ;;  %v27_v14 = vld [vmem:[#allocation2 + $0x8] sm:$0xff] }
   0xa   :  { %v29_v11 = vld [vmem:[#allocation2 + $0x18] sm:$0xff]  ;;  %p219_p3 = por %p218_p2, %p217_p1 }
   0xb   :  { %198 = vmatpush3.bf16.msra.mxu0 %v209_v4 }
   0xc   :  { %p220_p4 = pnand %p219_p3, %p213_p0 }
   0xe   :  { %200 = vmatmul.mubr.msk.bf16.vlgmr.msra.gmra.mxu0 %vm64_vm1, %v211_v5 }
  0xce   :  { %v201_v7 = vpop.f32.mrf.mxu0 }
  0xcf   :  { %v122_v9 = vadd.f32 %v201_v7, %v28_v6 }
  0xd0   :  { %v105_v10 = vpop.f32.mrf.mxu0 }
  0xd1   :  { %127 = vst.msk [vmem:[#allocation2 + $0x10] sm:$0xff] %vm17_vm0, %v122_v9  ;;  %v120_v12 = vadd.f32 %v105_v10, %v26_v8 }
  0xd2   :  { %v202_v13 = vpop.f32.mrf.mxu0 }
  0xd3   :  { %125 = vst.msk [vmem:[#allocation2] sm:$0xff] %vm17_vm0, %v120_v12  ;;  %v123_v15 = vadd.f32 %v202_v13, %v29_v11 }
  0xd4   :  { %v108_v16 = vpop.f32.mrf.mxu0 }
  0xd5   :  { %128 = vst.msk [vmem:[#allocation2 + $0x18] sm:$0xff] %vm17_vm0, %v123_v15  ;;  %v121_v17 = vadd.f32 %v108_v16, %v27_v14 }
  0xd7   :  { %126 = vst.msk [vmem:[#allocation2 + $0x8] sm:$0xff] %vm17_vm0, %v121_v17 }
  0xd8   :  { %v134_v18 = vld [vmem:[#allocation2 + $0x10] sm:$0xff] }
  0xd9   :  { %v186_v19 = vpack.c.bf16 %v134_v18, %v134_v18 }
  0xda   :  { %v132_v20 = vld [vmem:[#allocation2] sm:$0xff] }
  0xdb   :  { %v184_v21 = vpack.c.bf16 %v132_v20, %v132_v20  ;;  %155 = vst.msk [vmem:[#allocation3 + $0x8] sm:$0xf] %vm152_vm2, %v186_v19 }
  0xdc   :  { %v135_v22 = vld [vmem:[#allocation2 + $0x18] sm:$0xff] }
  0xdd   :  { %v187_v23 = vpack.c.bf16 %v135_v22, %v135_v22  ;;  %153 = vst.msk [vmem:[#allocation3] sm:$0xf] %vm152_vm2, %v184_v21 }
  0xde   :  { %v133_v24 = vld [vmem:[#allocation2 + $0x8] sm:$0xff] }
  0xdf   :  { %v185_v25 = vpack.c.bf16 %v133_v24, %v133_v24  ;;  %156 = vst.msk [vmem:[#allocation3 + $0xc] sm:$0xf] %vm152_vm2, %v187_v23 }
  0xe1   :  { %154 = vst.msk [vmem:[#allocation3 + $0x4] sm:$0xf] %vm152_vm2, %v185_v25 }
  0xe2   :  { %223 = shalt.err (!%p220_p4)
}
  0xe3   :  { %s236_s20 = smov 64   ;;  %s237_s21 = smov 4  }
  0xe4   :  { %168 = dma.vmem_to_hbm [thread:$0]  %s163_s1, 256, %s283_s2, [#allocation4], %s236_s20, %s236_s20, %s237_s21  }
  0xe5   :  { %232 = dma.done.wait [#allocation4], 256  }
  0xe6   :  { %233 = vsyncadd [#allocation4], 4294967040 }
  0xe7   :  { %172 = vsyncpa [#allocation4], 1 }

</bundles_post_ra>
